<compile_context>
chip_gen: v6e
topology: v6e:2x2x1
jax: 0.10.0
libtpu: 0.0.40
codegen_flags: <defaults>
</compile_context>

<pallas_src>
import functools

import jax
import jax.numpy as jnp
from jax import lax
from jax.experimental import pallas as pl
from jax.experimental.pallas import tpu as pltpu


def _se_kernel(x_ref, w1_ref, b1_ref, w2_ref, b2_ref, o_ref, *,
               inv_hw, use_mxu, scale_in_io_dtype):
    """x_ref / o_ref: (Bn, C, HW) tile. Weights are full-size and resident."""
    # --- Squeeze: global average pool over the spatial lanes. ---
    # f32 accumulation WITHOUT materializing an upcast copy of the tile; the
    # sum is scaled by 1/HW (exact spatial size) to give the mean.
    pooled = jnp.sum(x_ref[...], axis=-1, dtype=jnp.float32) * inv_hw   # (Bn, C)

    w1 = w1_ref[...].astype(jnp.float32)       # (S, C)
    b1 = b1_ref[...].astype(jnp.float32)       # (1, S)
    w2 = w2_ref[...].astype(jnp.float32)       # (C, S)
    b2 = b2_ref[...].astype(jnp.float32)       # (1, C)

    # --- Excite FC1 + ReLU. ---
    if use_mxu:
        # pooled (Bn,C) . w1 (S,C) contracting on C -> (Bn,S); MXU is idle
        # in this kernel, so this is effectively free for real SE sizes.
        h = lax.dot_general(pooled, w1, (((1,), (1,)), ((), ())),
                            preferred_element_type=jnp.float32)
    else:
        # Tiny-C fallback: VPU broadcast-multiply + lane reduce.
        h = jnp.sum(pooled[:, None, :] * w1[None, :, :], axis=-1)        # (Bn, S)
    h = jnp.maximum(h + b1, 0.0)

    # --- Excite FC2 + sigmoid. ---
    if use_mxu:
        g = lax.dot_general(h, w2, (((1,), (1,)), ((), ())),
                            preferred_element_type=jnp.float32)          # (Bn, C)
    else:
        g = jnp.sum(h[:, None, :] * w2[None, :, :], axis=-1)             # (Bn, C)
    g = jax.nn.sigmoid(g + b2)

    # --- Scale: re-read the resident input tile (no long-lived f32 copy).
    # Multiply in the I/O dtype on chips with a native-bf16 VPU (v6e/v7x);
    # f32 path for v5e or when the input is already f32.
    if scale_in_io_dtype:
        o_ref[...] = x_ref[...] * g.astype(o_ref.dtype)[:, :, None]
    else:
        o_ref[...] = (x_ref[...].astype(jnp.float32)
                      * g[:, :, None]).astype(o_ref.dtype)


def _vmem_capacity_bytes():
    try:
        return int(pltpu.get_tpu_info().vmem_capacity_bytes)
    except Exception:
        return 64 * 1024 * 1024        # conservative default (v7x per-core VMEM)


def _bf16_vpu_native():
    """True on generations with bf16 VALUs (v6e/v7x); False (f32 math) otherwise."""
    try:
        kind = jax.devices()[0].device_kind.lower()
    except Exception:
        return False
    return not any(t in kind for t in ("v2", "v3", "v4", "v5"))


def se_forward(x_nchw, w1, b1, w2, b2, *, block_n=None, donate_x=False):
    """SE forward.  x_nchw: (N,C,H,W); w1: (S,C); b1: (S,)|(S,1);
    w2: (C,S); b2: (C,)|(C,1)."""
    N, C, H, W = x_nchw.shape
    S = w1.shape[0]
    HW = H * W
    dtype = x_nchw.dtype
    itemsize = jnp.dtype(dtype).itemsize

    # Free metadata reshapes (contiguous): no HBM traffic.
    x = x_nchw.reshape(N, C, HW)
    b1_2d = b1.reshape(1, S)
    b2_2d = b2.reshape(1, C)

    vmem_cap = _vmem_capacity_bytes()
    vmem_budget = max(8 << 20, vmem_cap // 4)    # ~16 MiB on v7x, ~32 MiB on v5e/v6e

    scale_in_io_dtype = (dtype == jnp.float32) or _bf16_vpu_native()
    use_mxu = C >= 128                            # keep tiny C off the MXU

    # Batch blocking: biggest block under the VMEM budget (double-buffered
    # input + output => ~4x per-block bytes), but keep >= 4 grid steps when N
    # allows so both v7x TensorCores stay busy and the pipeline can overlap.
    per_item_bytes = C * HW * itemsize
    if block_n is None:
        budget_block = max(1, vmem_budget // (4 * per_item_bytes))
        block_n = max(1, min(budget_block, pl.cdiv(N, 4)))
    block_n = int(max(1, min(block_n, N)))
    grid = (pl.cdiv(N, block_n),)                 # batch remainder handled by Pallas
                                                  # (OOB rows read garbage, but their
                                                  #  stores are discarded -> correct)

    # vmem_limit from the real footprint: 2x in + 2x out buffers + weights
    # + possible f32 scale temp + headroom, capped at 3/4 of physical VMEM.
    block_bytes = block_n * per_item_bytes
    weight_bytes = (S * C + C * S + S + C) * 4
    f32_temp = 0 if scale_in_io_dtype else block_n * C * HW * 4
    vmem_limit = 4 * block_bytes + weight_bytes + f32_temp + (2 << 20)
    vmem_limit = int(max(16 << 20, min(vmem_limit, (vmem_cap * 3) // 4)))

    kernel = functools.partial(_se_kernel, inv_hw=float(1.0 / HW),
                               use_mxu=use_mxu,
                               scale_in_io_dtype=scale_in_io_dtype)

    # Purely HBM-bandwidth bound: one read + one write of x dominates.
    bytes_accessed = 2 * N * C * HW * itemsize + weight_bytes
    flops = 2 * N * C * HW + 2 * N * (S * C + C * S)

    # TODO(synk): for late SE stages with HW < 128 the output last dim is
    # lane-sparse (masked vst); a lane-dense re-layout would help there.
    out = pl.pallas_call(
        kernel,
        out_shape=jax.ShapeDtypeStruct((N, C, HW), dtype),
        grid_spec=pltpu.PrefetchScalarGridSpec(
            num_scalar_prefetch=0,
            grid=grid,
            in_specs=[
                pl.BlockSpec((block_n, C, HW), lambda n: (n, 0, 0)),  # x
                pl.BlockSpec((S, C), lambda n: (0, 0)),               # w1
                pl.BlockSpec((1, S), lambda n: (0, 0)),               # b1
                pl.BlockSpec((C, S), lambda n: (0, 0)),               # w2
                pl.BlockSpec((1, C), lambda n: (0, 0)),               # b2
            ],
            out_specs=pl.BlockSpec((block_n, C, HW), lambda n: (n, 0, 0)),
        ),
        compiler_params=pltpu.CompilerParams(
            dimension_semantics=("parallel",),
            vmem_limit_bytes=vmem_limit,
        ),
        cost_estimate=pl.CostEstimate(
            flops=flops,
            transcendentals=N * C,                # sigmoid
            bytes_accessed=bytes_accessed,
        ),
        input_output_aliases=({0: 0} if donate_x else {}),
    )(x, w1, b1_2d, w2, b2_2d)

    return out.reshape(N, C, H, W)


def se_reference(x, w1, b1, w2, b2):
    pooled = jnp.mean(x, axis=(2, 3), keepdims=True)                    # (N,C,1,1)
    h = jnp.einsum("sc,ncij->nsij", w1, pooled) + b1.reshape(1, -1, 1, 1)
    h = jnp.maximum(h, 0.0)
    s = jnp.einsum("cs,nsij->ncij", w2, h) + b2.reshape(1, -1, 1, 1)
    s = jax.nn.sigmoid(s)
    return x * s


if __name__ == "__main__":
    # Small shapes consistent with the module: in_planes=8, se_planes=4.
    N, C, S, H, W = 2, 8, 4, 16, 16

    key = jax.random.PRNGKey(0)
    kx, kw1, kb1, kw2, kb2 = jax.random.split(key, 5)

    x = jax.random.normal(kx, (N, C, H, W), dtype=jnp.float32)

    # Deterministic "1x1 conv" parameters (kaiming-uniform-ish scale).
    lim1 = 1.0 / jnp.sqrt(C)
    lim2 = 1.0 / jnp.sqrt(S)
    w1 = jax.random.uniform(kw1, (S, C), jnp.float32, -lim1, lim1)  # se1.weight (S,C,1,1)
    b1 = jax.random.uniform(kb1, (S,), jnp.float32, -lim1, lim1)    # se1.bias
    w2 = jax.random.uniform(kw2, (C, S), jnp.float32, -lim2, lim2)  # se2.weight (C,S,1,1)
    b2 = jax.random.uniform(kb2, (C,), jnp.float32, -lim2, lim2)    # se2.bias

    out = jax.block_until_ready(se_forward(x, w1, b1, w2, b2))

    ref = se_reference(x, w1, b1, w2, b2)
    assert out.shape == (N, C, H, W)
    assert jnp.allclose(out, ref, atol=1e-5, rtol=1e-5), "mismatch vs reference"

    print("KERNEL_OK")
</pallas_src>

<mosaic_0001>
module attributes {stable_mosaic.version = 11 : i64} {
  func.func @_se_kernel(%arg0: i32, %arg1: memref<1x8x256xf32, #tpu.memory_space<vmem>>, %arg2: memref<4x8xf32, #tpu.memory_space<vmem>>, %arg3: memref<1x4xf32, #tpu.memory_space<vmem>>, %arg4: memref<8x4xf32, #tpu.memory_space<vmem>>, %arg5: memref<1x8xf32, #tpu.memory_space<vmem>>, %arg6: memref<1x8x256xf32, #tpu.memory_space<vmem>>) attributes {dimension_semantics = [#tpu.dimension_semantics<parallel>], iteration_bounds = array<i64: 2>, scalar_prefetch = 0 : i64, scratch_operands = 0 : i64, tpu.core_type = #tpu.core_type<tc>, window_params = [{transform_indices = @transform_0, window_bounds = array<i64: 1, 8, 256>}, {pipeline_mode = #tpu.pipeline_mode<synchronous>, transform_indices = @transform_1, window_bounds = array<i64: 4, 8>}, {pipeline_mode = #tpu.pipeline_mode<synchronous>, transform_indices = @transform_2, window_bounds = array<i64: 1, 4>}, {pipeline_mode = #tpu.pipeline_mode<synchronous>, transform_indices = @transform_3, window_bounds = array<i64: 8, 4>}, {pipeline_mode = #tpu.pipeline_mode<synchronous>, transform_indices = @transform_4, window_bounds = array<i64: 1, 8>}, {transform_indices = @transform_5, window_bounds = array<i64: 1, 8, 256>}]} {
    %c0 = arith.constant 0 : index
    %c0_0 = arith.constant 0 : index
    %c0_1 = arith.constant 0 : index
    %0 = vector.load %arg1[%c0, %c0_0, %c0_1] : memref<1x8x256xf32, #tpu.memory_space<vmem>>, vector<1x8x256xf32>
    %cst = arith.constant dense<0.000000e+00> : vector<1x8xf32>
    %1 = vector.multi_reduction <add>, %0, %cst [2] : vector<1x8x256xf32> to vector<1x8xf32>
    %cst_2 = arith.constant 3.906250e-03 : f32
    %2 = vector.broadcast %cst_2 : f32 to vector<1x8xf32>
    %3 = arith.mulf %1, %2 : vector<1x8xf32>
    %c0_3 = arith.constant 0 : index
    %c0_4 = arith.constant 0 : index
    %4 = vector.load %arg2[%c0_3, %c0_4] : memref<4x8xf32, #tpu.memory_space<vmem>>, vector<4x8xf32>
    %c0_5 = arith.constant 0 : index
    %c0_6 = arith.constant 0 : index
    %5 = vector.load %arg3[%c0_5, %c0_6] : memref<1x4xf32, #tpu.memory_space<vmem>>, vector<1x4xf32>
    %c0_7 = arith.constant 0 : index
    %c0_8 = arith.constant 0 : index
    %6 = vector.load %arg4[%c0_7, %c0_8] : memref<8x4xf32, #tpu.memory_space<vmem>>, vector<8x4xf32>
    %c0_9 = arith.constant 0 : index
    %c0_10 = arith.constant 0 : index
    %7 = vector.load %arg5[%c0_9, %c0_10] : memref<1x8xf32, #tpu.memory_space<vmem>>, vector<1x8xf32>
    %8 = vector.shape_cast %3 : vector<1x8xf32> to vector<1x1x8xf32>
    %9 = vector.shape_cast %4 : vector<4x8xf32> to vector<1x4x8xf32>
    %10 = vector.broadcast %8 : vector<1x1x8xf32> to vector<1x4x8xf32>
    %11 = arith.mulf %10, %9 : vector<1x4x8xf32>
    %cst_11 = arith.constant dense<0.000000e+00> : vector<1x4xf32>
    %12 = vector.multi_reduction <add>, %11, %cst_11 [2] : vector<1x4x8xf32> to vector<1x4xf32>
    %13 = arith.addf %12, %5 : vector<1x4xf32>
    %cst_12 = arith.constant 0.000000e+00 : f32
    %14 = vector.broadcast %cst_12 : f32 to vector<1x4xf32>
    %15 = arith.maximumf %13, %14 : vector<1x4xf32>
    %16 = vector.shape_cast %15 : vector<1x4xf32> to vector<1x1x4xf32>
    %17 = vector.shape_cast %6 : vector<8x4xf32> to vector<1x8x4xf32>
    %18 = vector.broadcast %16 : vector<1x1x4xf32> to vector<1x8x4xf32>
    %19 = arith.mulf %18, %17 : vector<1x8x4xf32>
    %cst_13 = arith.constant dense<0.000000e+00> : vector<1x8xf32>
    %20 = vector.multi_reduction <add>, %19, %cst_13 [2] : vector<1x8x4xf32> to vector<1x8xf32>
    %21 = arith.addf %20, %7 : vector<1x8xf32>
    %22 = arith.negf %21 : vector<1x8xf32>
    %23 = math.exp %22 : vector<1x8xf32>
    %cst_14 = arith.constant 1.000000e+00 : f32
    %24 = vector.broadcast %cst_14 : f32 to vector<1x8xf32>
    %25 = arith.addf %24, %23 : vector<1x8xf32>
    %26 = arith.divf %24, %25 : vector<1x8xf32>
    %c0_15 = arith.constant 0 : index
    %c0_16 = arith.constant 0 : index
    %c0_17 = arith.constant 0 : index
    %27 = vector.load %arg1[%c0_15, %c0_16, %c0_17] : memref<1x8x256xf32, #tpu.memory_space<vmem>>, vector<1x8x256xf32>
    %28 = vector.shape_cast %26 : vector<1x8xf32> to vector<1x8x1xf32>
    %29 = vector.broadcast %28 : vector<1x8x1xf32> to vector<1x8x256xf32>
    %30 = arith.mulf %27, %29 : vector<1x8x256xf32>
    %c0_18 = arith.constant 0 : index
    %c0_19 = arith.constant 0 : index
    %c0_20 = arith.constant 0 : index
    %31 = vector.load %arg6[%c0_18, %c0_19, %c0_20] : memref<1x8x256xf32, #tpu.memory_space<vmem>>, vector<1x8x256xf32>
    tpu.vector_store %arg6[%c0_18, %c0_19, %c0_20], %30 {strides = array<i32>} : memref<1x8x256xf32, #tpu.memory_space<vmem>>, vector<1x8x256xf32>,
    return
  }
  func.func @transform_0(%arg0: i32) -> (i32, i32, i32) {
    %c0_i32 = arith.constant 0 : i32
    %c0_i32_0 = arith.constant 0 : i32
    %c0_i32_1 = arith.constant 0 : i32
    return %arg0, %c0_i32, %c0_i32_0 : i32, i32, i32
  }
  func.func @transform_1(%arg0: i32) -> (i32, i32) {
    %c0_i32 = arith.constant 0 : i32
    %c0_i32_0 = arith.constant 0 : i32
    %c0_i32_1 = arith.constant 0 : i32
    return %c0_i32, %c0_i32_0 : i32, i32
  }
  func.func @transform_2(%arg0: i32) -> (i32, i32) {
    %c0_i32 = arith.constant 0 : i32
    %c0_i32_0 = arith.constant 0 : i32
    %c0_i32_1 = arith.constant 0 : i32
    return %c0_i32, %c0_i32_0 : i32, i32
  }
  func.func @transform_3(%arg0: i32) -> (i32, i32) {
    %c0_i32 = arith.constant 0 : i32
    %c0_i32_0 = arith.constant 0 : i32
    %c0_i32_1 = arith.constant 0 : i32
    return %c0_i32, %c0_i32_0 : i32, i32
  }
  func.func @transform_4(%arg0: i32) -> (i32, i32) {
    %c0_i32 = arith.constant 0 : i32
    %c0_i32_0 = arith.constant 0 : i32
    %c0_i32_1 = arith.constant 0 : i32
    return %c0_i32, %c0_i32_0 : i32, i32
  }
  func.func @transform_5(%arg0: i32) -> (i32, i32, i32) {
    %c0_i32 = arith.constant 0 : i32
    %c0_i32_0 = arith.constant 0 : i32
    %c0_i32_1 = arith.constant 0 : i32
    return %arg0, %c0_i32, %c0_i32_0 : i32, i32, i32
  }
}

</mosaic_0001>

<bundles_post_ra>
// kernel: tpu_custom_call.1
= control target key start
LH: loop header
LB: loop body
LE: loop exit
PB: predicated region body
PF: predicated region fallthrough
CT: control target
= control target key end

     0   :  { %10 = vsyncpa [#allocation3], 0  ;;  %s1008_s0 = inlined_call_operand.hbm [shape: f32[2,8,256], index: 0, kind: input, shape index: {}]   ;;  %s1009_s1 = inlined_call_operand.vmem [shape: f32[4,8], index: 1, kind: input, shape index: {}]   ;;  %s1010_s2 = inlined_call_operand.vmem [shape: f32[1,4], index: 2, kind: input, shape index: {}]   ;;  %s1011_s3 = inlined_call_operand.vmem [shape: f32[8,4], index: 3, kind: input, shape index: {}]   ;;  %s1012_s4 = inlined_call_operand.vmem [shape: f32[1,8], index: 4, kind: input, shape index: {}]   ;;  %s1013_s5 = inlined_call_operand.hbm [shape: f32[2,8,256], index: 5, kind: output, shape index: {}]  }
   0x1   :  { %12 = vsyncpa [#allocation3 + $0x1], 0 }
   0x2   :  { %13 = vsyncpa [#allocation4], 0 }
   0x3   :  { %15 = vsyncpa [#allocation4 + $0x1], 0  ;;  %s806_s18 = smov 0   ;;  %s808_s19 = smov 0  }
   0x4   :  { %s810_s20 = smov 0   ;;  %s812_s21 = smov 0  }
   0x5 LB: > { %s827_s22 = sadd.s32 4294967295, %s771_s21   ;;  %s607_s23 = sadd.s32 4294967294, %s771_s21   ;;  %s771_s21 = sphi %s812_s21, %s1030_s21   ;;  %s767_s20 = sphi %s810_s20, %s1029_s20   ;;  %s763_s19 = sphi %s808_s19, %s1028_s19   ;;  %s759_s18 = sphi %s806_s18, %s1027_s18  }
   0x6   : > { %s831_s24 = sadd.s32 1, %s771_s21   ;;  %s28_s25 = sadd.s32 1, %s767_s20 }
   0x7   : > { %s25_s26 = ssub.s32 %s771_s21, %s831_s24  ;;  %p35_p0 = scmp.ne.s32.totalorder %s767_s20, %s763_s19 }
   0x8   : > { %p26_p1 = scmp.eq.s32.totalorder %s25_s26, 0  ;;  %p36_p2 = scmp.eq.s32.totalorder %s771_s21, 0 }
   0x9   : > { %p41_p3 = scmp.ne.s32.totalorder %s763_s19, %s759_s18  ;;  %p42_p4 = scmp.eq.s32.totalorder %s827_s22, 0 }
   0xa   : > { %s843_s27 = scalar_select %p26_p1, %s767_s20, %s28_s25  }
   0xb   : > { %p845_p5 = por %p36_p2, %p35_p0  ;;  %p849_p6 = por %p42_p4, %p41_p3 }
   0xc   : > { %p149_p7 = scmp.eq.s32.totalorder %s827_s22, 1  ;;  %p155_p8 = scmp.eq.s32.totalorder %s607_s23, 1 }
   0xd   : > { %s1017_s29 = scalar_select %p849_p6, 1, 0 }
   0xe   : > { %p638_p10 = scmp.lt.s32.totalorder %s771_s21, 2  ;;  %p856_p11 = por %p149_p7, %p35_p0 }
   0xf   : > { %p860_p12 = por %p155_p8, %p41_p3  ;;  %s187_s7 = sand.u32 1, %s767_s20  }
  0x10   : > { %s1018_s30 = scalar_select %p856_p11, 1, 0 }
  0x11   : > { %s1019_s6 = scalar_select %p860_p12, 1, 0 }
  0x12   : > { %s624_s8 = sshll.u32 %s771_s21, 8  ;;  %s610_s9 = sshll.u32 %s187_s7, 4 }
  0x13   : > { %s869_s12 = scalar_lea.hbm %s1008_s0, %s624_s8  ;;  %s191_s13 = scalar_lea.vmem [#allocation2], %s610_s9 }
  0x14   : > { %s199_s14 = sshll.u32 %s191_s13, 4  ;;  %p873_p13 = pnand %p638_p10, %p845_p5  ;;  %s877_s14 = int_to_ptr.vmem [resolvable:$true] %s199_s14 }
  0x15   : > { %s188_s16 = scalar_lea.sflag [#allocation3], %s187_s7  ;;  %s679_s17 = scalar_lea.hbm %s869_s12, 256 }
  0x16   : > { %p680_p2 = scmp.ne.s32.totalorder %s869_s12, %s679_s17  ;;  %p681_p3 = pneg %p873_p13 }
  0x17   : > { %s684_s26 = scalar_lea.hbm %s1008_s0, 512  ;;  %p685_p5 = scmp.lt.s32.totalorder %s869_s12, %s1008_s0 }
  0x18   : > { %p682_p4 = pnand %p681_p3, %p680_p2  ;;  %p686_p8 = scmp.lt.s32.totalorder %s684_s26, %s679_s17 }
  0x1a   : > { %p683_p7 = pneg %p682_p4  ;;  %p687_p10 = por %p686_p8, %p685_p5 }
  0x1c   : > { %p688_p9 = pnand %p687_p10, %p683_p7 }
  0x1e   : > { %691 = shalt.err (!%p688_p9)
}
  0x1f   : > { %s692_s7 = scalar_lea.vmem %s877_s14, 256  ;;  %s773_s9 = smov [#allocation2]  }
  0x20   : > { %p693_p0 = scmp.ne.s32.totalorder %s877_s14, %s692_s7  ;;  %s697_s10 = sshll.u32 %s773_s9, 4  ;;  %s698_s10 = int_to_ptr.vmem [resolvable:$false] %s697_s10 }
  0x21   : > { %s699_s11 = scalar_lea.vmem %s698_s10, 512  ;;  %p700_p4 = scmp.lt.s32.totalorder %s877_s14, %s698_s10 }
  0x22   : > { %p695_p1 = pnand %p693_p0, %p681_p3  ;;  %p701_p12 = scmp.lt.s32.totalorder %s699_s11, %s692_s7 }
  0x24   : > { %p696_p2 = pneg %p695_p1  ;;  %p702_p11 = por %p701_p12, %p700_p4 }
  0x26   : > { %p703_p6 = pnand %p702_p11, %p696_p2 }
  0x28   : > { %706 = shalt.err (!%p703_p6)
}
  0x29   : > { %633 = dma.hbm_to_vmem [thread:$0]  (!%p873_p13), %s869_s12, 256, %s877_s14, %s188_s16  }
  0x2a   : > { %p1021_p9 = scmp.lt.s32.totalorder %s771_s21, 3  ;;  %p1022_p7 = scmp.ge.s32.totalorder %s771_s21, 1 }
  0x2c   : > { %p205_p0 = pnand %p1022_p7, %p1021_p9 }
  0x2d   : > { %s904_s13 = sand.u32 (!%p205_p0), 1, %s763_s19   ;;  %p1023_p6 = scmp.ne.s32.totalorder (!%p205_p0), %s1017_s29, 0 }
  0x2e   : > { %208 = sbr.rel (%p205_p0) target bundleno = 946 (0x3b2), region = 40  ;;  %s614_s17 = sshll.u32 (!%p205_p0), %s904_s13, 4 }
  0x2f   : > { %s211_s23 = scalar_lea.sflag (!%p205_p0), [#allocation3], %s904_s13  ;;  %s214_s15 = scalar_lea.vmem (!%p205_p0), [#allocation2], %s614_s17 }
  0x33   : > { %750 = dma.done.wait (%p1023_p6), %s211_s23, 256  }
  0x34   : > { %752 = vsyncadd (%p1023_p6), %s211_s23, 4294967040  ;;  %v252_v0 = vlaneseq  ;;  %v918_v4 = vld [vmem:[%s214_s15] sm:$0xff]  ;;  %v920_v5 = vld [vmem:[%s214_s15 + $0x8] sm:$0xff]  ;;  %v774_v13 = vmov 0   ;;  %vm322_vm0 = vcmask 1041409   ;;  %vm324_vm1 = vcmask 1042434  }
  0x35   : > { %v247_v6 = vld [vmem:[%s1009_s1] sm:$0xf]  ;;  %v243_v7 = vadd.f32 %v920_v5, %v918_v4  ;;  %673 = vset.pattern.permute.xlu1 %v774_v13  ;;  %674 = vset.pattern.permute.xlu0 %v774_v13  ;;  %vm326_vm2 = vcmask 1043459   ;;  %vm329_vm3 = vcmask 60416   ;;  %vm484_vm4 = vcmask 1044484   ;;  %s625_s7 = sshll.u32 %s827_s22, 8 }
  0x36   : > { %v914_v1 = vshrl.u32 %v252_v0, 7  ;;  %v616_v25 = vld [vmem:[%s1010_s2] ss:$0 sm:$0xff]  ;;  %v305_v38 = vand.u32 127, %v252_v0  ;;  %vm486_vm5 = vcmask 1045509   ;;  %vm488_vm6 = vcmask 1046534   ;;  %s971_s15 = scalar_lea.hbm %s1013_s5, %s625_s7 }
  0x37   : > { %244 = vadd.xlane.f32.xlu0 %v243_v7  ;;  %v249_v26 = vld [vmem:[%s1011_s3] sm:$0xff]  ;;  %vm490_vm7 = vcmask 1047559   ;;  %vm493_vm8 = vcmask 31744   ;;  %s240_s9 = scalar_lea.vmem [#allocation5], %s614_s17  ;;  %s523_s12 = scalar_lea.sflag [#allocation4], %s904_s13 }
  0x38   : > { %v261_v2 = vsub.s32 1, %v914_v1  ;;  %v268_v3 = vsub.s32 2, %v914_v1  ;;  %v275_v10 = vsub.s32 3, %v914_v1  ;;  %v254_v12 = vsub.s32 0, %v914_v1  ;;  %s537_s10 = sshll.u32 %s240_s9, 4  ;;  %p1024_p12 = scmp.ne.s32.totalorder %s1018_s30, 0  ;;  %s538_s10 = int_to_ptr.vmem [resolvable:$true] %s537_s10 }
  0x39   : > { %v375_v31 = vsub.s32 4, %v914_v1  ;;  %v382_v33 = vsub.s32 5, %v914_v1  ;;  %v389_v35 = vsub.s32 6, %v914_v1  ;;  %v939_v40 = vsub.s32 %v305_v38, %v914_v1  ;;  %s707_s14 = scalar_lea.vmem %s538_s10, 256  ;;  %s775_s22 = smov [#allocation5]  }
  0x3a   : > { %v262_v8 = vrot.slane %v247_v6, %v261_v2  ;;  %v269_v9 = vrot.slane %v247_v6, %v268_v3  ;;  %v276_v11 = vrot.slane %v247_v6, %v275_v10  ;;  %v255_v14 = vrot.slane %v247_v6, %v254_v12  ;;  %p708_p11 = scmp.ne.s32.totalorder %s538_s10, %s707_s14  ;;  %s711_s17 = sshll.u32 %s775_s22, 4  ;;  %s712_s17 = int_to_ptr.vmem [resolvable:$false] %s711_s17 }
  0x3b   : > { %v348_v27 = vrot.slane %v249_v26, %v254_v12  ;;  %v355_v28 = vrot.slane %v249_v26, %v261_v2  ;;  %v362_v29 = vrot.slane %v249_v26, %v268_v3  ;;  %v369_v30 = vrot.slane %v249_v26, %v275_v10  ;;  %s713_s29 = scalar_lea.vmem %s712_s17, 512  ;;  %p714_p3 = scmp.lt.s32.totalorder %s538_s10, %s712_s17 }
  0x3c   : > { %264 = vbcast.lane.b32.xlu1 %v262_v8, 256  ;;  %v376_v32 = vrot.slane %v249_v26, %v375_v31  ;;  %v383_v34 = vrot.slane %v249_v26, %v382_v33  ;;  %v390_v36 = vrot.slane %v249_v26, %v389_v35  ;;  %v396_v51 = vsub.s32 7, %v914_v1  ;;  %p709_p13 = pnand %p708_p11, %p1024_p12  ;;  %p715_p5 = scmp.lt.s32.totalorder %s713_s29, %s707_s14 }
  0x3e   : > { %v397_v52 = vrot.slane %v249_v26, %v396_v51  ;;  %p710_p1 = pneg %p709_p13  ;;  %p716_p8 = por %p715_p5, %p714_p3 }
  0x40   : > { %271 = vbcast.lane.b32.xlu1 %v269_v9, 256  ;;  %p717_p10 = pnand %p716_p8, %p710_p1 }
  0x44   : > { %278 = vbcast.lane.b32.xlu1 %v276_v11, 256  ;;  %v617_v11 = vld [vmem:[%s1012_s4] ss:$0 sm:$0xff] }
  0x4d   : > { %257 = vbcast.lane.b32.xlu0 %v255_v14, 256 }
  0xae   : > { %v265_v16 = vpop.permute.xlu1 %264 }
  0xb2   : > { %v272_v20 = vpop.permute.xlu1 %271 }
  0xb6   : > { %v279_v23 = vpop.permute.xlu1 %278 }
  0xc0   : > { %v245_v15 = vpop.xlane.xlu0 %244 }
  0xc1   : > { %v246_v17 = vmul.f32 0.00390625, %v245_v15 }
  0xc3   : > { %v285_v21 = vmul.f32 %v265_v16, %v246_v17  ;;  %v286_v22 = vmul.f32 %v272_v20, %v246_v17  ;;  %v287_v24 = vmul.f32 %v279_v23, %v246_v17 }
  0xc4   : > { %v258_v18 = vpop.permute.xlu0 %257 }
  0xc5   : > { %v284_v19 = vmul.f32 %v258_v18, %v246_v17 }
  0xc7   : > { %293 = vperm.xlu1 %673, %v284_v19  }
  0xcb   : > { %296 = vperm.xlu1 %673, %v285_v21  }
  0xcf   : > { %299 = vperm.xlu1 %673, %v286_v22  }
  0xd3   : > { %302 = vperm.xlu1 %673, %v287_v24  }
  0xd7   : > { %339 = vbcast.lane.b32.xlu1 %v616_v25, 256 }
  0xdb   : > { %350 = vbcast.lane.b32.xlu1 %v348_v27, 256 }
  0xdf   : > { %357 = vbcast.lane.b32.xlu1 %v355_v28, 256 }
  0xe3   : > { %364 = vbcast.lane.b32.xlu1 %v362_v29, 256 }
  0xe7   : > { %371 = vbcast.lane.b32.xlu1 %v369_v30, 256 }
  0xeb   : > { %378 = vbcast.lane.b32.xlu1 %v376_v32, 256 }
  0xef   : > { %385 = vbcast.lane.b32.xlu1 %v383_v34, 256 }
  0xf3   : > { %392 = vbcast.lane.b32.xlu1 %v390_v36, 256 }
 0x142   : > { %v294_v37 = vpop.permute.xlu1 %293 }
 0x143   : > { %v309_v44 = vrot.slane %v294_v37, %v939_v40 }
 0x146   : > { %v297_v39 = vpop.permute.xlu1 %296 }
 0x147   : > { %v313_v42 = vrot.slane %v297_v39, %v939_v40 }
 0x149   : > { %v323_v46 = vsel %vm322_vm0, %v313_v42, %v309_v44 }
 0x14a   : > { %v300_v41 = vpop.permute.xlu1 %299 }
 0x14b   : > { %v317_v43 = vrot.slane %v300_v41, %v939_v40 }
 0x14d   : > { %v325_v48 = vsel %vm324_vm1, %v317_v43, %v323_v46 }
 0x14e   : > { %v303_v45 = vpop.permute.xlu1 %302 }
 0x14f   : > { %v321_v47 = vrot.slane %v303_v45, %v939_v40 }
 0x151   : > { %v327_v49 = vsel %vm326_vm2, %v321_v47, %v325_v48 }
 0x152   : > { %v330_v50 = vsel %vm329_vm3, %v327_v49, 0.0  ;;  %v340_v53 = vpop.permute.xlu1 %339 }
 0x153   : > { %331 = vadd.xlane.f32.xlu0 %v330_v50 }
 0x156   : > { %v351_v54 = vpop.permute.xlu1 %350 }
 0x15a   : > { %v358_v55 = vpop.permute.xlu1 %357 }
 0x15e   : > { %v365_v56 = vpop.permute.xlu1 %364 }
 0x162   : > { %v372_v57 = vpop.permute.xlu1 %371 }
 0x166   : > { %v379_v58 = vpop.permute.xlu1 %378 }
 0x169   : > { %399 = vbcast.lane.b32.xlu0 %v397_v52, 256 }
 0x16a   : > { %v386_v62 = vpop.permute.xlu1 %385 }
 0x16e   : > { %v393_v7 = vpop.permute.xlu1 %392 }
 0x1dc   : > { %v332_v59 = vpop.xlane.xlu0 %331 }
 0x1dd   : > { %v342_v60 = vadd.f32 %v340_v53, %v332_v59 }
 0x1df   : > { %v343_v61 = vmax.f32 %v342_v60, 0.0 }
 0x1e0   : > { %v400_v9 = vpop.permute.xlu0 %399 }
 0x1e1   : > { %v414_v63 = vmul.f32 %v386_v62, %v343_v61  ;;  %v409_v0 = vmul.f32 %v351_v54, %v343_v61  ;;  %v410_v2 = vmul.f32 %v358_v55, %v343_v61  ;;  %v411_v3 = vmul.f32 %v365_v56, %v343_v61 }
 0x1e2   : > { %v412_v1 = vmul.f32 %v372_v57, %v343_v61  ;;  %v413_v6 = vmul.f32 %v379_v58, %v343_v61  ;;  %v415_v8 = vmul.f32 %v393_v7, %v343_v61  ;;  %v416_v10 = vmul.f32 %v400_v9, %v343_v61 }
 0x1e3   : > { %426 = vperm.xlu1 %673, %v409_v0   ;;  %441 = vperm.xlu0 %674, %v414_v63  }
 0x1e7   : > { %429 = vperm.xlu1 %673, %v410_v2  }
 0x1eb   : > { %432 = vperm.xlu1 %673, %v411_v3  }
 0x1ef   : > { %435 = vperm.xlu1 %673, %v412_v1  }
 0x1f3   : > { %438 = vperm.xlu1 %673, %v413_v6  }
 0x1f7   : > { %444 = vperm.xlu1 %673, %v415_v8  }
 0x1fb   : > { %447 = vperm.xlu1 %673, %v416_v10  }
 0x1ff   : > { %503 = vbcast.lane.b32.xlu1 %v617_v11, 256 }
 0x25e   : > { %v427_v12 = vpop.permute.xlu1 %426  ;;  %v442_v23 = vpop.permute.xlu0 %441 }
 0x25f   : > { %v452_v19 = vrot.slane %v427_v12, %v939_v40  ;;  %v472_v29 = vrot.slane %v442_v23, %v939_v40 }
 0x262   : > { %v430_v13 = vpop.permute.xlu1 %429 }
 0x263   : > { %v456_v16 = vrot.slane %v430_v13, %v939_v40 }
 0x265   : > { %v481_v22 = vsel %vm322_vm0, %v456_v16, %v452_v19 }
 0x266   : > { %v433_v14 = vpop.permute.xlu1 %432 }
 0x267   : > { %v460_v17 = vrot.slane %v433_v14, %v939_v40 }
 0x269   : > { %v482_v24 = vsel %vm324_vm1, %v460_v17, %v481_v22 }
 0x26a   : > { %v436_v15 = vpop.permute.xlu1 %435 }
 0x26b   : > { %v464_v20 = vrot.slane %v436_v15, %v939_v40 }
 0x26d   : > { %v483_v26 = vsel %vm326_vm2, %v464_v20, %v482_v24 }
 0x26e   : > { %v439_v18 = vpop.permute.xlu1 %438 }
 0x26f   : > { %v468_v21 = vrot.slane %v439_v18, %v939_v40 }
 0x271   : > { %v485_v27 = vsel %vm484_vm4, %v468_v21, %v483_v26 }
 0x272   : > { %v445_v25 = vpop.permute.xlu1 %444  ;;  %v487_v32 = vsel %vm486_vm5, %v472_v29, %v485_v27 }
 0x273   : > { %v476_v28 = vrot.slane %v445_v25, %v939_v40 }
 0x275   : > { %v489_v33 = vsel %vm488_vm6, %v476_v28, %v487_v32 }
 0x276   : > { %v448_v30 = vpop.permute.xlu1 %447 }
 0x277   : > { %v480_v31 = vrot.slane %v448_v30, %v939_v40 }
 0x279   : > { %v491_v34 = vsel %vm490_vm7, %v480_v31, %v489_v33 }
 0x27a   : > { %v494_v35 = vsel %vm493_vm8, %v491_v34, 0.0  ;;  %v504_v36 = vpop.permute.xlu1 %503 }
 0x27b   : > { %495 = vadd.xlane.f32.xlu0 %v494_v35 }
 0x304   : > { %v496_v37 = vpop.xlane.xlu0 %495 }
 0x305   : > { %v506_v38 = vadd.f32 %v504_v36, %v496_v37 }
 0x307   : > { %v618_v39 = vmul.f32 -1.442695, %v506_v38 }
 0x309   : > { %675 = vpow2.f32 %v618_v39 }
 0x316   : > { %v676_v41 = vpop.eup %675 }
 0x317   : > { %v510_v42 = vadd.f32 1.0, %v676_v41 }
 0x319   : > { %677 = vrcp.f32 %v510_v42 }
 0x326   : > { %v678_v43 = vpop.eup %677 }
 0x327   : > { %515 = vperm.xlu1 %673, %v678_v43  }
 0x3a2   : > { %v516_v40 = vpop.permute.xlu1 %515 }
 0x3a3   : > { %v518_v44 = vmul.f32 %v516_v40, %v918_v4  ;;  %v519_v45 = vmul.f32 %v516_v40, %v920_v5 }
 0x3a5   : > { %520 = vst [vmem:[%s240_s9] sm:$0xff] %v518_v44  ;;  %521 = vst [vmem:[%s240_s9 + $0x8] sm:$0xff] %v519_v45 }
 0x3a6   : > { %720 = shalt.err (!%p717_p10)
}
 0x3a7   : > { %s721_s16 = scalar_lea.hbm %s971_s15, 256  ;;  %s725_s26 = scalar_lea.hbm %s1013_s5, 512 }
 0x3a8   : > { %p722_p2 = scmp.ne.s32.totalorder %s971_s15, %s721_s16  ;;  %p726_p7 = scmp.lt.s32.totalorder %s971_s15, %s1013_s5 }
 0x3a9   : > { %p727_p0 = scmp.lt.s32.totalorder %s725_s26, %s721_s16 }
 0x3aa   : > { %p723_p4 = pnand %p722_p2, %p1024_p12 }
 0x3ab   : > { %p728_p6 = por %p727_p0, %p726_p7 }
 0x3ac   : > { %p724_p9 = pneg %p723_p4 }
 0x3ae   : > { %p729_p11 = pnand %p728_p6, %p724_p9 }
 0x3b0   : > { %732 = shalt.err (!%p729_p11)
}
 0x3b1   : > { %628 = dma.vmem_to_hbm [thread:$0]  (%p1024_p12), %s538_s10, 256, %s971_s15, %s523_s12  }
 0x3b2 PF: > { %s549_s7 = sand.u32 1, %s759_s18   ;;  %p1025_p13 = scmp.ne.s32.totalorder %s1019_s6, 0 }
 0x3b3   : > { %p1026_p1 = scmp.ge.s32.totalorder %s771_s21, 2  ;;  %s550_s9 = scalar_lea.sflag [#allocation4], %s549_s7 }
 0x3b5   : > { %p635_p3 = pnand %p1026_p1, %p1025_p13 }
 0x3b7   : > { %p636_p5 = pneg %p635_p3 }
 0x3b9   : > { %754 = dma.done.wait (%p636_p5), %s550_s9, 256  }
 0x3ba   : > { %756 = vsyncadd (%p636_p5), %s550_s9, 4294967040  ;;  %p18_p8 = scmp.ge.s32.totalorder %s831_s24, 4   ;;  %s1027_s18 = smov %s763_s19 }
 0x3bb   : > { %s1028_s19 = smov %s767_s20  ;;  %s1029_s20 = smov %s843_s27 }
 0x3bc   : > { %s1030_s21 = smov %s831_s24  ;;  %20 = sbr.rel (!%p18_p8) target bundleno = 5 (0x5), region = 85 }
 0x3c1   :  { %555 = vsyncpa [#allocation3], 1 }
 0x3c2   :  { %557 = vsyncpa [#allocation3 + $0x1], 1 }
 0x3c3   :  { %558 = vsyncpa [#allocation4], 1 }
 0x3c4   :  { %560 = vsyncpa [#allocation4 + $0x1], 1 }

</bundles_post_ra>
